<compile_context>
chip_gen: v5e
topology: v5e:2x2
jax: 0.10.0
libtpu: 0.0.40
codegen_flags: <defaults>
</compile_context>

<pallas_src>
import functools
import math

import jax
import jax.numpy as jnp
from jax import lax
from jax.experimental import pallas as pl
from jax.experimental.pallas import tpu as pltpu

_LOG_2PI = 1.8378770664093453  # log(2*pi)


def _round_up(v, m):
    return (v + m - 1) // m * m


def _cdiv(a, b):
    return (a + b - 1) // b


def _make_loglik_kernel(*, d, bd, chunk, n_k):
    """Builds the kernel for static plan (d, bd, chunk, n_k).

    Refs seen by the kernel:
      x_ref:   (tn, bd)     x slab, native dtype (partial at boundaries)
      mu_ref:  (1, bd)      mean slice for this D block, f32
      isg_ref: (1, bd)      inv_sigma slice for this D block, f32
      out_ref: (tn, chunk)  lane-dense f32 accumulator / output block
    """
    n_chunks = bd // chunk
    ragged = (d % bd) != 0  # only the last D block can be ragged

    def kernel(x_ref, mu_ref, isg_ref, out_ref):
        k = pl.program_id(1)

        @pl.when(k == 0)
        def _():
            out_ref[...] = jnp.zeros_like(out_ref)

        def accumulate(masked):
            if masked:
                lane = lax.broadcasted_iota(jnp.int32, (1, chunk), 1)
                valid = d - k * bd  # number of valid lanes in this D block

            def emit(j):
                off = j * chunk
                if not isinstance(off, int):
                    off = pl.multiple_of(off, chunk)
                xc = x_ref[:, pl.ds(off, chunk)].astype(jnp.float32)
                muc = mu_ref[:, pl.ds(off, chunk)]
                isc = isg_ref[:, pl.ds(off, chunk)]
                z = (xc - muc) * isc
                zsq = z * z
                if masked:
                    # Garbage lanes of a partial x block may be NaN/Inf:
                    # select, never multiply-by-zero.
                    zsq = jnp.where(lane < (valid - off), zsq, 0.0)
                out_ref[...] += zsq

            if n_chunks <= 16:
                for j in range(n_chunks):        # fully unrolled, static offsets
                    emit(j)
            else:
                def body(j, carry):
                    emit(j)
                    return carry
                lax.fori_loop(0, n_chunks, body, 0, unroll=8)

        if not ragged:
            accumulate(False)
        elif n_k == 1:
            accumulate(True)
        else:
            @pl.when(k < n_k - 1)
            def _():
                accumulate(False)

            @pl.when(k == n_k - 1)
            def _():
                accumulate(True)

    return kernel


@functools.partial(jax.jit, static_argnames=("block_n", "block_d"))
def adversarial_distribution_forward(x_nchw, mu, log_sigma,
                                     block_n=256, block_d=None):
    """Pallas forward pass of AdversarialDistribution (= model.log_likelihood).

    Args:
      x_nchw:    (N, C, H, W) input batch (f32 / bf16 / f16 / u8 / i8).
      mu:        (C, H, W)    Gaussian mean parameter.
      log_sigma: (C, H, W)    Gaussian log-std parameter.
    Returns:
      (N,) float32 per-sample log-likelihood.
    """
    n = x_nchw.shape[0]
    d = int(math.prod(x_nchw.shape[1:]))

    x2 = x_nchw.reshape(n, d)                       # view, no HBM copy
    if x2.dtype not in (jnp.float32, jnp.bfloat16, jnp.float16,
                        jnp.int8, jnp.uint8):
        x2 = x2.astype(jnp.float32)
    itemsize = x2.dtype.itemsize

    ls = log_sigma.reshape(-1).astype(jnp.float32)
    mu_flat = mu.reshape(-1).astype(jnp.float32)
    isg_flat = jnp.exp(-ls)
    # x-independent part of the density, hoisted out of the kernel.
    const = -jnp.sum(ls) - 0.5 * d * _LOG_2PI

    sub = {4: 8, 2: 16, 1: 32}.get(itemsize, 8)     # sublane multiple per dtype

    # ---- N tiling: multiple-of-sub tiles <= n; split so >=2 tiles (megacore)
    if n < sub:
        tn = n                                      # block == full dim, no partial rows
    else:
        tn = max(sub, (min(block_n, n) // sub) * sub)
        if _cdiv(n, tn) < 2 and n >= 2 * sub:       # keep both v7x TCs busy
            tn = max(sub, (_cdiv(n, 2) // sub) * sub)
    n_tiles = _cdiv(n, tn)

    # ---- D tiling: dtype-aware ~4 MiB slabs, bd <= d (no over-sized blocks)
    if d <= 128:
        bd = d
    else:
        if block_d is None:
            bd_t = (4 << 20) // max(tn * itemsize, 1)
        else:
            bd_t = int(block_d)
        bd = min(bd_t, (d // 128) * 128)
        bd = max(128, (bd // 128) * 128)
    n_k = _cdiv(d, bd)
    d_pad = n_k * bd

    if bd % 128 != 0:
        chunk = bd                                   # tiny-D case (bd == d < 128)
    elif bd % 512 == 0:
        chunk = 512
    elif bd % 256 == 0:
        chunk = 256
    else:
        chunk = 128

    # Pad ONLY the tiny parameter vectors (x itself is streamed unpadded).
    if d_pad != d:
        mu_flat = jnp.pad(mu_flat, (0, d_pad - d))
        isg_flat = jnp.pad(isg_flat, (0, d_pad - d))
    mu2 = mu_flat.reshape(n_k, bd)
    isg2 = isg_flat.reshape(n_k, bd)

    kernel = _make_loglik_kernel(d=d, bd=bd, chunk=chunk, n_k=n_k)

    # ---- VMEM budget from the actual plan (x double-buffered, streamed params,
    #      resident output block); capped by the chip's physical VMEM.
    vmem_need = (2 * tn * bd * itemsize      # x slab, double buffered
                 + 2 * 2 * bd * 4            # mu + inv_sigma (1, bd) blocks
                 + 2 * tn * chunk * 4)       # output/accumulator block
    try:
        vmem_cap = int(getattr(pltpu.get_tpu_info(), "vmem_capacity_bytes",
                               64 << 20))
    except Exception:
        vmem_cap = 64 << 20
    vmem_limit = int(min(vmem_need + (16 << 20),
                         max(vmem_cap - (8 << 20), vmem_need + (4 << 20))))

    cost = pl.CostEstimate(
        flops=4 * n * d,
        transcendentals=0,
        bytes_accessed=n * d * itemsize + n_tiles * d_pad * 8 + n * chunk * 4,
    )

    partial_sums = pl.pallas_call(
        kernel,
        out_shape=jax.ShapeDtypeStruct((n, chunk), jnp.float32),
        grid_spec=pltpu.PrefetchScalarGridSpec(
            num_scalar_prefetch=0,
            grid=(n_tiles, n_k),                      # N parallel, D reduction last
            in_specs=[
                pl.BlockSpec((tn, bd), lambda i, k: (i, k)),   # x slab
                pl.BlockSpec((1, bd), lambda i, k: (k, 0)),    # mu slice (streamed)
                pl.BlockSpec((1, bd), lambda i, k: (k, 0)),    # inv_sigma slice
            ],
            out_specs=pl.BlockSpec((tn, chunk), lambda i, k: (i, 0)),
        ),
        compiler_params=pltpu.CompilerParams(
            dimension_semantics=("parallel", "arbitrary"),
            vmem_limit_bytes=vmem_limit,
        ),
        cost_estimate=cost,
    )(x2, mu2, isg2)

    # Lane-dense epilogue: final reduce + constant fused by XLA.
    return const - 0.5 * jnp.sum(partial_sums, axis=-1)


def _reference_forward(x_nchw, mu, log_sigma):
    n = x_nchw.shape[0]
    x2 = x_nchw.reshape(n, -1).astype(jnp.float32)
    mu2 = mu.reshape(1, -1).astype(jnp.float32)
    ls2 = log_sigma.reshape(1, -1).astype(jnp.float32)
    z = (x2 - mu2) * jnp.exp(-ls2)
    term = -0.5 * z * z - ls2 - 0.5 * _LOG_2PI
    return jnp.sum(term, axis=-1)


if __name__ == "__main__":
    key = jax.random.PRNGKey(0)

    # --- primary small test: N=2, C=4, H=16, W=16 (D=1024, single D block) ---
    k_x, k_mu, k_ls, key = jax.random.split(key, 4)
    N, C, H, W = 2, 4, 16, 16
    x = jax.random.normal(k_x, (N, C, H, W), dtype=jnp.float32)
    mu = 0.1 * jax.random.normal(k_mu, (C, H, W), dtype=jnp.float32)
    log_sigma = 0.05 * jax.random.normal(k_ls, (C, H, W), dtype=jnp.float32)

    logp = adversarial_distribution_forward(x, mu, log_sigma)
    jax.block_until_ready(logp)
    ref = _reference_forward(x, mu, log_sigma)
    assert logp.shape == (N,)
    assert jnp.allclose(logp, ref, rtol=1e-5, atol=1e-3), (logp, ref)

    # --- test 2: D not a multiple of 128 (ragged D tail, in-kernel mask) -----
    k_x2, k_mu2, k_ls2, key = jax.random.split(key, 4)
    N2, C2, H2, W2 = 16, 3, 28, 28
    x_b = jax.random.normal(k_x2, (N2, C2, H2, W2), dtype=jnp.float32)
    mu_b = 0.1 * jax.random.normal(k_mu2, (C2, H2, W2), dtype=jnp.float32)
    ls_b = 0.05 * jax.random.normal(k_ls2, (C2, H2, W2), dtype=jnp.float32)

    logp_b = adversarial_distribution_forward(x_b, mu_b, ls_b)
    jax.block_until_ready(logp_b)
    ref_b = _reference_forward(x_b, mu_b, ls_b)
    assert logp_b.shape == (N2,)
    assert jnp.allclose(logp_b, ref_b, rtol=1e-5, atol=1e-3), (logp_b, ref_b)

    # --- test 3: N not a multiple of 8 (ragged last N tile, 2 N tiles) -------
    k_x3, k_mu3, k_ls3, key = jax.random.split(key, 4)
    N3, C3, H3, W3 = 10, 3, 32, 32
    x_c = jax.random.normal(k_x3, (N3, C3, H3, W3), dtype=jnp.float32)
    mu_c = 0.1 * jax.random.normal(k_mu3, (C3, H3, W3), dtype=jnp.float32)
    ls_c = 0.05 * jax.random.normal(k_ls3, (C3, H3, W3), dtype=jnp.float32)

    logp_c = adversarial_distribution_forward(x_c, mu_c, ls_c)
    jax.block_until_ready(logp_c)
    ref_c = _reference_forward(x_c, mu_c, ls_c)
    assert logp_c.shape == (N3,)
    assert jnp.allclose(logp_c, ref_c, rtol=1e-5, atol=1e-3), (logp_c, ref_c)

    # --- test 4: bf16 input path (native-dtype streaming, f32 accumulate) ----
    x_bf16 = x_b.astype(jnp.bfloat16)
    logp_d = adversarial_distribution_forward(x_bf16, mu_b, ls_b)
    jax.block_until_ready(logp_d)
    ref_d = _reference_forward(x_bf16, mu_b, ls_b)
    assert logp_d.shape == (N2,)
    assert jnp.allclose(logp_d, ref_d, rtol=1e-4, atol=1e-2), (logp_d, ref_d)

    print("KERNEL_OK")
</pallas_src>

<mosaic_0001>
module attributes {stable_mosaic.version = 11 : i64} {
  func.func @kernel(%arg0: i32, %arg1: i32, %arg2: memref<2x1024xf32, #tpu.memory_space<vmem>>, %arg3: memref<1x1024xf32, #tpu.memory_space<vmem>>, %arg4: memref<1x1024xf32, #tpu.memory_space<vmem>>, %arg5: memref<2x512xf32, #tpu.memory_space<vmem>>) attributes {dimension_semantics = [#tpu.dimension_semantics<parallel>, #tpu.dimension_semantics<arbitrary>], iteration_bounds = array<i64: 1, 1>, scalar_prefetch = 0 : i64, scratch_operands = 0 : i64, tpu.core_type = #tpu.core_type<tc>, window_params = [{transform_indices = @transform_0, window_bounds = array<i64: 2, 1024>}, {transform_indices = @transform_1, window_bounds = array<i64: 1, 1024>}, {transform_indices = @transform_2, window_bounds = array<i64: 1, 1024>}, {transform_indices = @transform_3, window_bounds = array<i64: 2, 512>}]} {
    %c0_i32 = arith.constant 0 : i32
    %0 = arith.cmpi eq, %arg1, %c0_i32 : i32
    %1 = arith.extui %0 : i1 to i32
    %c0_i32_0 = arith.constant 0 : i32
    %2 = arith.cmpi ne, %1, %c0_i32_0 : i32
    scf.if %2 {
      %cst = arith.constant 0.000000e+00 : f32
      %25 = vector.broadcast %cst : f32 to vector<2x512xf32>
      %c0_19 = arith.constant 0 : index
      %c0_20 = arith.constant 0 : index
      %26 = vector.load %arg5[%c0_19, %c0_20] : memref<2x512xf32, #tpu.memory_space<vmem>>, vector<2x512xf32>
      tpu.vector_store %arg5[%c0_19, %c0_20], %25 {strides = array<i32>} : memref<2x512xf32, #tpu.memory_space<vmem>>, vector<2x512xf32>,
    } else {
    }
    %c0 = arith.constant 0 : index
    %c0_1 = arith.constant 0 : index
    %3 = vector.load %arg2[%c0, %c0_1] : memref<2x1024xf32, #tpu.memory_space<vmem>>, vector<2x512xf32>
    %c0_2 = arith.constant 0 : index
    %c0_3 = arith.constant 0 : index
    %4 = vector.load %arg3[%c0_2, %c0_3] : memref<1x1024xf32, #tpu.memory_space<vmem>>, vector<1x512xf32>
    %c0_4 = arith.constant 0 : index
    %c0_5 = arith.constant 0 : index
    %5 = vector.load %arg4[%c0_4, %c0_5] : memref<1x1024xf32, #tpu.memory_space<vmem>>, vector<1x512xf32>
    %6 = vector.broadcast %4 : vector<1x512xf32> to vector<2x512xf32>
    %7 = arith.subf %3, %6 : vector<2x512xf32>
    %8 = vector.broadcast %5 : vector<1x512xf32> to vector<2x512xf32>
    %9 = arith.mulf %7, %8 : vector<2x512xf32>
    %10 = arith.mulf %9, %9 : vector<2x512xf32>
    %c0_6 = arith.constant 0 : index
    %c0_7 = arith.constant 0 : index
    %11 = vector.load %arg5[%c0_6, %c0_7] : memref<2x512xf32, #tpu.memory_space<vmem>>, vector<2x512xf32>
    %12 = arith.addf %11, %10 : vector<2x512xf32>
    %c0_8 = arith.constant 0 : index
    %c0_9 = arith.constant 0 : index
    %13 = vector.load %arg5[%c0_8, %c0_9] : memref<2x512xf32, #tpu.memory_space<vmem>>, vector<2x512xf32>
    tpu.vector_store %arg5[%c0_8, %c0_9], %12 {strides = array<i32>} : memref<2x512xf32, #tpu.memory_space<vmem>>, vector<2x512xf32>,
    %c0_10 = arith.constant 0 : index
    %c512 = arith.constant 512 : index
    %14 = vector.load %arg2[%c0_10, %c512] : memref<2x1024xf32, #tpu.memory_space<vmem>>, vector<2x512xf32>
    %c0_11 = arith.constant 0 : index
    %c512_12 = arith.constant 512 : index
    %15 = vector.load %arg3[%c0_11, %c512_12] : memref<1x1024xf32, #tpu.memory_space<vmem>>, vector<1x512xf32>
    %c0_13 = arith.constant 0 : index
    %c512_14 = arith.constant 512 : index
    %16 = vector.load %arg4[%c0_13, %c512_14] : memref<1x1024xf32, #tpu.memory_space<vmem>>, vector<1x512xf32>
    %17 = vector.broadcast %15 : vector<1x512xf32> to vector<2x512xf32>
    %18 = arith.subf %14, %17 : vector<2x512xf32>
    %19 = vector.broadcast %16 : vector<1x512xf32> to vector<2x512xf32>
    %20 = arith.mulf %18, %19 : vector<2x512xf32>
    %21 = arith.mulf %20, %20 : vector<2x512xf32>
    %c0_15 = arith.constant 0 : index
    %c0_16 = arith.constant 0 : index
    %22 = vector.load %arg5[%c0_15, %c0_16] : memref<2x512xf32, #tpu.memory_space<vmem>>, vector<2x512xf32>
    %23 = arith.addf %22, %21 : vector<2x512xf32>
    %c0_17 = arith.constant 0 : index
    %c0_18 = arith.constant 0 : index
    %24 = vector.load %arg5[%c0_17, %c0_18] : memref<2x512xf32, #tpu.memory_space<vmem>>, vector<2x512xf32>
    tpu.vector_store %arg5[%c0_17, %c0_18], %23 {strides = array<i32>} : memref<2x512xf32, #tpu.memory_space<vmem>>, vector<2x512xf32>,
    return
  }
  func.func @transform_0(%arg0: i32, %arg1: i32) -> (i32, i32) {
    %c0_i32 = arith.constant 0 : i32
    return %arg0, %arg1 : i32, i32
  }
  func.func @transform_1(%arg0: i32, %arg1: i32) -> (i32, i32) {
    %c0_i32 = arith.constant 0 : i32
    %c0_i32_0 = arith.constant 0 : i32
    return %arg1, %c0_i32 : i32, i32
  }
  func.func @transform_2(%arg0: i32, %arg1: i32) -> (i32, i32) {
    %c0_i32 = arith.constant 0 : i32
    %c0_i32_0 = arith.constant 0 : i32
    return %arg1, %c0_i32 : i32, i32
  }
  func.func @transform_3(%arg0: i32, %arg1: i32) -> (i32, i32) {
    %c0_i32 = arith.constant 0 : i32
    %c0_i32_0 = arith.constant 0 : i32
    return %arg0, %c0_i32 : i32, i32
  }
}

</mosaic_0001>

<bundles_post_ra>
// kernel: adversarial_distribution_forward.1
= control target key start
LH: loop header
LB: loop body
LE: loop exit
PB: predicated region body
PF: predicated region fallthrough
CT: control target
= control target key end

     0   :  { %vm30_vm0 = vcmask 1041408   ;;  %vm32_vm1 = vcmask 1045508   ;;  %vm34_vm2 = vcmask 1043456   ;;  %s146_s1 = inlined_call_operand.vmem [shape: f32[1,1024], index: 1, kind: input, shape index: {}]   ;;  %s147_s2 = inlined_call_operand.vmem [shape: f32[1,1024], index: 2, kind: input, shape index: {}]   ;;  %s148_s0 = inlined_call_operand.vmem [shape: f32[2,1024], index: 0, kind: input, shape index: {}]   ;;  %s149_s3 = inlined_call_operand.vmem [shape: f32[2,512], index: 3, kind: output, shape index: {}]  }
   0x1   :  { %v20_v0 = vld [vmem:[%s146_s1] sm:$0xf]  ;;  %v56_v10 = vld [vmem:[%s146_s1 + $0x4] sm:$0xf]  ;;  %v55_v33 = vld [vmem:[%s148_s0 + $0x8] sm:$0xff] }
   0x2   :  { %v21_v1 = vld [vmem:[%s147_s2] sm:$0xf]  ;;  %v23_v2 = vperm.slane %v20_v0, 0  ;;  %v24_v3 = vperm.slane %v20_v0, 1  ;;  %v25_v4 = vperm.slane %v20_v0, 2  ;;  %v26_v5 = vperm.slane %v20_v0, 3 }
   0x3   :  { %v39_v6 = vperm.slane %v21_v1, 0  ;;  %v40_v7 = vperm.slane %v21_v1, 1  ;;  %v41_v8 = vperm.slane %v21_v1, 2  ;;  %v42_v9 = vperm.slane %v21_v1, 3  ;;  %v19_v15 = vld [vmem:[%s148_s0] sm:$0xff] }
   0x4   :  { %v27_v11 = vrot.slane %v24_v3, 6  ;;  %v28_v12 = vrot.slane %v25_v4, 4  ;;  %v29_v13 = vrot.slane %v26_v5, 2  ;;  %v59_v14 = vperm.slane %v56_v10, 0  ;;  %v57_v22 = vld [vmem:[%s147_s2 + $0x4] sm:$0xf] }
   0x5   :  { %v43_v16 = vrot.slane %v40_v7, 6  ;;  %v44_v17 = vrot.slane %v41_v8, 4  ;;  %v45_v18 = vrot.slane %v42_v9, 2  ;;  %v60_v19 = vperm.slane %v56_v10, 1 }
   0x6   :  { %v31_v20 = vsel %vm30_vm0, %v23_v2, %v27_v11  ;;  %v33_v21 = vsel %vm32_vm1, %v28_v12, %v29_v13  ;;  %v61_v23 = vperm.slane %v56_v10, 2  ;;  %v62_v24 = vperm.slane %v56_v10, 3 }
   0x7   :  { %v35_v25 = vsel %vm34_vm2, %v31_v20, %v33_v21  ;;  %v46_v26 = vsel %vm30_vm0, %v39_v6, %v43_v16  ;;  %v47_v27 = vsel %vm32_vm1, %v44_v17, %v45_v18  ;;  %v63_v28 = vrot.slane %v60_v19, 6 }
   0x8   :  { %v37_v29 = vsub.f32 %v19_v15, %v35_v25  ;;  %v48_v30 = vsel %vm34_vm2, %v46_v26, %v47_v27  ;;  %v64_v31 = vrot.slane %v61_v23, 4  ;;  %v65_v32 = vrot.slane %v62_v24, 2 }
   0x9   :  { %v66_v34 = vsel %vm30_vm0, %v59_v14, %v63_v28  ;;  %v72_v35 = vperm.slane %v57_v22, 0  ;;  %v73_v36 = vperm.slane %v57_v22, 1  ;;  %v74_v37 = vperm.slane %v57_v22, 2 }
   0xa   :  { %v50_v38 = vmul.f32 %v48_v30, %v37_v29  ;;  %v67_v39 = vsel %vm32_vm1, %v64_v31, %v65_v32  ;;  %v75_v40 = vperm.slane %v57_v22, 3 }
   0xb   :  { %v68_v41 = vsel %vm34_vm2, %v66_v34, %v67_v39  ;;  %v76_v42 = vrot.slane %v73_v36, 6  ;;  %v77_v43 = vrot.slane %v74_v37, 4 }
   0xc   :  { %v51_v44 = vmul.f32 %v50_v38, %v50_v38  ;;  %v70_v45 = vsub.f32 %v55_v33, %v68_v41  ;;  %v78_v46 = vrot.slane %v75_v40, 2 }
   0xd   :  { %v79_v47 = vsel %vm30_vm0, %v72_v35, %v76_v42 }
   0xe   :  { %v80_v48 = vsel %vm32_vm1, %v77_v43, %v78_v46 }
   0xf   :  { %v81_v49 = vsel %vm34_vm2, %v79_v47, %v80_v48 }
  0x10   :  { %v83_v50 = vmul.f32 %v81_v49, %v70_v45 }
  0x12   :  { %v84_v51 = vmul.f32 %v83_v50, %v83_v50 }
  0x14   :  { %v86_v52 = vadd.f32 %v84_v51, %v51_v44 }
  0x16   :  { %87 = vst [vmem:[%s149_s3] sm:$0xff] %v86_v52 }

</bundles_post_ra>
